<compile_context>
chip_gen: v7x
topology: tpu7x:2x2x1
jax: 0.10.0
libtpu: 0.0.40
codegen_flags: <defaults>
</compile_context>

<pallas_src>
import functools

import jax
import jax.numpy as jnp
import numpy as np
from jax.experimental import pallas as pl
from jax.experimental.pallas import tpu as pltpu

SPEC_LOG_MUL = 1.0
SPEC_LOG_ADD = 1.0


# ---------------------------------------------------------------------------
# Host-side (float64) deterministic constants.
# ---------------------------------------------------------------------------
def _round_up(x, m):
    return -(-x // m) * m


def _hann_window_np(n_fft):
    n = np.arange(n_fft, dtype=np.float64)
    return 0.5 - 0.5 * np.cos(2.0 * np.pi * n / n_fft)   # periodic Hann (torch default)


def _dft_bases_np(n_fft):
    n_freq = n_fft // 2 + 1
    n = np.arange(n_fft, dtype=np.float64)[:, None]
    k = np.arange(n_freq, dtype=np.float64)[None, :]
    ang = 2.0 * np.pi * (n * k) / float(n_fft)
    return np.cos(ang), np.sin(ang)                       # each (n_fft, n_freq)


def _hz_to_mel_htk(f):
    return 2595.0 * np.log10(1.0 + f / 700.0)


def _mel_to_hz_htk(m):
    return 700.0 * (10.0 ** (m / 2595.0) - 1.0)


def _melscale_fbanks_np(n_freqs, f_min, f_max, n_mels, sample_rate):
    """torchaudio.functional.melscale_fbanks (mel_scale='htk', norm=None)."""
    all_freqs = np.linspace(0.0, sample_rate / 2.0, n_freqs)
    m_pts = np.linspace(_hz_to_mel_htk(f_min), _hz_to_mel_htk(f_max), n_mels + 2)
    f_pts = _mel_to_hz_htk(m_pts)
    f_diff = f_pts[1:] - f_pts[:-1]                       # (n_mels + 1,)
    slopes = f_pts[None, :] - all_freqs[:, None]          # (n_freqs, n_mels + 2)
    down = -slopes[:, :-2] / f_diff[:-1]
    up = slopes[:, 2:] / f_diff[1:]
    return np.maximum(0.0, np.minimum(down, up))          # (n_freqs, n_mels)


@functools.lru_cache(maxsize=None)
def _build_constants(sample_rate, n_fft, n_mels):
    """Window-folded, lane-padded DFT basis (bf16) and zero-padded mel fbank (f32)."""
    n_freq = n_fft // 2 + 1
    n_freq_pad = _round_up(n_freq, 128)                   # 129 -> 256
    n_mels_pad = _round_up(n_mels, 128)                   # 32  -> 128

    win = _hann_window_np(n_fft)
    cos_m, sin_m = _dft_bases_np(n_fft)
    basis = np.zeros((n_fft, 2 * n_freq_pad), dtype=np.float64)
    basis[:, :n_freq] = cos_m * win[:, None]                               # windowed cos
    basis[:, n_freq_pad:n_freq_pad + n_freq] = sin_m * win[:, None]        # windowed sin

    fb = np.zeros((n_freq_pad, n_mels_pad), dtype=np.float64)
    fb[:n_freq, :n_mels] = _melscale_fbanks_np(
        n_freq, 0.0, sample_rate / 2.0, n_mels, sample_rate)

    return (jnp.asarray(basis, dtype=jnp.bfloat16),
            jnp.asarray(fb, dtype=jnp.float32),
            n_freq_pad, n_mels_pad)


# ---------------------------------------------------------------------------
# Pallas kernel: merged windowed-DFT matmul -> magnitude -> mel matmul -> log10.
# ---------------------------------------------------------------------------
def _logmel_kernel(frames_ref, basis_ref, fb_ref, o_ref,
                   *, spec_log_mul, spec_log_add, n_freq_pad):
    # (TM, n_fft) bf16 @ (n_fft, 2*n_freq_pad) bf16 -> f32 accumulation on the MXU.
    ri = jnp.dot(frames_ref[...], basis_ref[...],
                 preferred_element_type=jnp.float32)       # (TM, 2*n_freq_pad)
    re = ri[:, :n_freq_pad]                                # 128-aligned slices
    im = ri[:, n_freq_pad:]
    mag = jnp.sqrt(re * re + im * im)                      # power=1 spectrogram (f32)
    mel = jnp.dot(mag, fb_ref[...],
                  preferred_element_type=jnp.float32)      # (TM, n_mels_pad)
    o_ref[...] = jnp.log10(mel * spec_log_mul + spec_log_add)


def log_mel_spec(x, *, sample_rate, n_fft, hop_size, frequency_bins,
                 spec_log_mul=SPEC_LOG_MUL, spec_log_add=SPEC_LOG_ADD):
    """JAX/Pallas equivalent of LogMelSpec.forward.  x: (..., time) float."""
    x = x.astype(jnp.float32)
    *lead, T = x.shape
    n_mels = frequency_bins
    basis, fb, n_freq_pad, n_mels_pad = _build_constants(sample_rate, n_fft, n_mels)

    # --- glue: center=True reflect padding + framing (pure JAX) ---
    # TODO(synk): fuse framing into the kernel (overlapping-window blocks / manual DMA)
    #             to avoid materializing the ~2x-waveform frame matrix in HBM.
    xf = x.reshape((-1, T))
    pad = n_fft // 2
    xp = jnp.pad(xf, ((0, 0), (pad, pad)), mode="reflect")
    n_frames = 1 + T // hop_size
    idx = jnp.arange(n_frames)[:, None] * hop_size + jnp.arange(n_fft)[None, :]
    frames = xp[:, idx]                                    # (prod(lead), n_frames, n_fft)
    R = frames.shape[0] * n_frames
    frames = frames.reshape(R, n_fft)

    # --- row tiling: large MXU-friendly tile, clamped for tiny inputs ---
    TM = min(256, _round_up(R, 8))
    R_pad = _round_up(R, TM)
    frames = jnp.pad(frames, ((0, R_pad - R), (0, 0))).astype(jnp.bfloat16)

    kernel = functools.partial(_logmel_kernel,
                               spec_log_mul=float(spec_log_mul),
                               spec_log_add=float(spec_log_add),
                               n_freq_pad=n_freq_pad)

    out = pl.pallas_call(
        kernel,
        out_shape=jax.ShapeDtypeStruct((R_pad, n_mels_pad), jnp.float32),
        grid_spec=pltpu.PrefetchScalarGridSpec(
            num_scalar_prefetch=0,
            grid=(R_pad // TM,),
            in_specs=[
                pl.BlockSpec((TM, n_fft), lambda i: (i, 0)),
                pl.BlockSpec((n_fft, 2 * n_freq_pad), lambda i: (0, 0)),   # resident
                pl.BlockSpec((n_freq_pad, n_mels_pad), lambda i: (0, 0)),  # resident
            ],
            out_specs=pl.BlockSpec((TM, n_mels_pad), lambda i: (i, 0)),
        ),
        compiler_params=pltpu.CompilerParams(
            dimension_semantics=("parallel",)),
    )(frames, basis, fb)

    out = out[:R, :n_mels].reshape(*lead, n_frames, n_mels)
    # (..., n_frames, n_mels) -> (..., n_mels, n_frames)   (torchaudio convention)
    return jnp.swapaxes(out, -1, -2)


# ---------------------------------------------------------------------------
# Pure-JAX f32 reference (same math, no Pallas, highest matmul precision).
# ---------------------------------------------------------------------------
def _reference(x, *, sample_rate, n_fft, hop_size, frequency_bins,
               spec_log_mul=SPEC_LOG_MUL, spec_log_add=SPEC_LOG_ADD):
    x = x.astype(jnp.float32)
    *lead, T = x.shape
    n_freq = n_fft // 2 + 1
    xf = x.reshape((-1, T))
    pad = n_fft // 2
    xp = jnp.pad(xf, ((0, 0), (pad, pad)), mode="reflect")
    n_frames = 1 + T // hop_size
    idx = jnp.arange(n_frames)[:, None] * hop_size + jnp.arange(n_fft)[None, :]
    win = jnp.asarray(_hann_window_np(n_fft), jnp.float32)
    frames = xp[:, idx] * win[None, None, :]
    cos_m, sin_m = _dft_bases_np(n_fft)
    hi = jax.lax.Precision.HIGHEST
    re = jnp.einsum("bfn,nk->bfk", frames, jnp.asarray(cos_m, jnp.float32), precision=hi)
    im = jnp.einsum("bfn,nk->bfk", frames, jnp.asarray(sin_m, jnp.float32), precision=hi)
    mag = jnp.sqrt(re * re + im * im)
    fb = jnp.asarray(_melscale_fbanks_np(n_freq, 0.0, sample_rate / 2.0,
                                         frequency_bins, sample_rate), jnp.float32)
    mel = jnp.einsum("bfk,km->bfm", mag, fb, precision=hi)
    out = jnp.log10(mel * spec_log_mul + spec_log_add)
    out = out.reshape(*lead, n_frames, frequency_bins)
    return jnp.swapaxes(out, -1, -2)


if __name__ == "__main__":
    sample_rate = 16000
    n_fft = 256
    hop_size = 128
    frequency_bins = 32   # n_mels

    key = jax.random.PRNGKey(0)
    x = jax.random.normal(key, (2, 2048), dtype=jnp.float32)   # (batch, samples)

    y = log_mel_spec(x, sample_rate=sample_rate, n_fft=n_fft,
                     hop_size=hop_size, frequency_bins=frequency_bins)
    y = jax.block_until_ready(y)

    y_ref = _reference(x, sample_rate=sample_rate, n_fft=n_fft,
                       hop_size=hop_size, frequency_bins=frequency_bins)

    assert y.shape == (2, frequency_bins, 1 + 2048 // hop_size), y.shape
    np.testing.assert_allclose(np.asarray(y), np.asarray(y_ref), rtol=2e-2, atol=2e-2)

    print("KERNEL_OK")
</pallas_src>

<mosaic_0001>
module attributes {stable_mosaic.version = 11 : i64} {
  func.func @_logmel_kernel(%arg0: i32, %arg1: memref<40x256xbf16, #tpu.memory_space<vmem>>, %arg2: memref<256x512xbf16, #tpu.memory_space<vmem>>, %arg3: memref<256x128xf32, #tpu.memory_space<vmem>>, %arg4: memref<40x128xf32, #tpu.memory_space<vmem>>) attributes {dimension_semantics = [#tpu.dimension_semantics<parallel>], iteration_bounds = array<i64: 1>, scalar_prefetch = 0 : i64, scratch_operands = 0 : i64, tpu.core_type = #tpu.core_type<tc>, window_params = [{transform_indices = @transform_0, window_bounds = array<i64: 40, 256>}, {pipeline_mode = #tpu.pipeline_mode<synchronous>, transform_indices = @transform_1, window_bounds = array<i64: 256, 512>}, {pipeline_mode = #tpu.pipeline_mode<synchronous>, transform_indices = @transform_2, window_bounds = array<i64: 256, 128>}, {transform_indices = @transform_3, window_bounds = array<i64: 40, 128>}]} {
    %c0 = arith.constant 0 : index
    %c0_0 = arith.constant 0 : index
    %0 = vector.load %arg1[%c0, %c0_0] : memref<40x256xbf16, #tpu.memory_space<vmem>>, vector<40x256xbf16>
    %c0_1 = arith.constant 0 : index
    %c0_2 = arith.constant 0 : index
    %1 = vector.load %arg2[%c0_1, %c0_2] : memref<256x512xbf16, #tpu.memory_space<vmem>>, vector<256x512xbf16>
    %cst = arith.constant dense<0.000000e+00> : vector<40x512xf32>
    %2 = tpu.matmul %0, %1, %cst {dimension_numbers = #tpu.dot_dimension_numbers<[1], [0], [0], [1], [0, 0, 1, 1], [], []>} : vector<40x256xbf16>, vector<256x512xbf16>, vector<40x512xf32> -> vector<40x512xf32>
    %3 = vector.extract_strided_slice %2 {offsets = [0, 0], sizes = [40, 256], strides = [1, 1]} : vector<40x512xf32> to vector<40x256xf32>
    %4 = vector.extract_strided_slice %2 {offsets = [0, 256], sizes = [40, 256], strides = [1, 1]} : vector<40x512xf32> to vector<40x256xf32>
    %5 = arith.mulf %3, %3 : vector<40x256xf32>
    %6 = arith.mulf %4, %4 : vector<40x256xf32>
    %7 = arith.addf %5, %6 : vector<40x256xf32>
    %8 = math.sqrt %7 : vector<40x256xf32>
    %c0_3 = arith.constant 0 : index
    %c0_4 = arith.constant 0 : index
    %9 = vector.load %arg3[%c0_3, %c0_4] : memref<256x128xf32, #tpu.memory_space<vmem>>, vector<256x128xf32>
    %cst_5 = arith.constant dense<0.000000e+00> : vector<40x128xf32>
    %10 = tpu.matmul %8, %9, %cst_5 {dimension_numbers = #tpu.dot_dimension_numbers<[1], [0], [0], [1], [0, 0, 1, 1], [], []>} : vector<40x256xf32>, vector<256x128xf32>, vector<40x128xf32> -> vector<40x128xf32>
    %cst_6 = arith.constant 1.000000e+00 : f32
    %11 = vector.broadcast %cst_6 : f32 to vector<40x128xf32>
    %12 = arith.mulf %10, %11 : vector<40x128xf32>
    %cst_7 = arith.constant 1.000000e+00 : f32
    %13 = vector.broadcast %cst_7 : f32 to vector<40x128xf32>
    %14 = arith.addf %12, %13 : vector<40x128xf32>
    %15 = math.log %14 : vector<40x128xf32>
    %cst_8 = arith.constant 0.434294492 : f32
    %16 = vector.broadcast %cst_8 : f32 to vector<40x128xf32>
    %17 = arith.mulf %15, %16 : vector<40x128xf32>
    %c0_9 = arith.constant 0 : index
    %c0_10 = arith.constant 0 : index
    %18 = vector.load %arg4[%c0_9, %c0_10] : memref<40x128xf32, #tpu.memory_space<vmem>>, vector<40x128xf32>
    tpu.vector_store %arg4[%c0_9, %c0_10], %17 {strides = array<i32>} : memref<40x128xf32, #tpu.memory_space<vmem>>, vector<40x128xf32>,
    return
  }
  func.func @transform_0(%arg0: i32) -> (i32, i32) {
    %c0_i32 = arith.constant 0 : i32
    %c0_i32_0 = arith.constant 0 : i32
    return %arg0, %c0_i32 : i32, i32
  }
  func.func @transform_1(%arg0: i32) -> (i32, i32) {
    %c0_i32 = arith.constant 0 : i32
    %c0_i32_0 = arith.constant 0 : i32
    %c0_i32_1 = arith.constant 0 : i32
    return %c0_i32, %c0_i32_0 : i32, i32
  }
  func.func @transform_2(%arg0: i32) -> (i32, i32) {
    %c0_i32 = arith.constant 0 : i32
    %c0_i32_0 = arith.constant 0 : i32
    %c0_i32_1 = arith.constant 0 : i32
    return %c0_i32, %c0_i32_0 : i32, i32
  }
  func.func @transform_3(%arg0: i32) -> (i32, i32) {
    %c0_i32 = arith.constant 0 : i32
    %c0_i32_0 = arith.constant 0 : i32
    return %arg0, %c0_i32 : i32, i32
  }
}

</mosaic_0001>

<bundles_post_ra>
// kernel: tpu_custom_call.1
= control target key start
LH: loop header
LB: loop body
LE: loop exit
PB: predicated region body
PF: predicated region fallthrough
CT: control target
= control target key end

     0   :  { %8 = vsyncpa [#allocation3], 0  ;;  %s1430_s0 = inlined_call_operand.hbm [shape: bf16[40,256], index: 0, kind: input, shape index: {}]   ;;  %s1431_s1 = inlined_call_operand.hbm [shape: bf16[256,512], index: 1, kind: input, shape index: {}]   ;;  %s1432_s2 = inlined_call_operand.hbm [shape: f32[256,128], index: 2, kind: input, shape index: {}]   ;;  %s1433_s3 = inlined_call_operand.hbm [shape: f32[40,128], index: 3, kind: output, shape index: {}]  }
   0x1   :  { %9 = vsyncpa [#allocation6], 0 }
   0x2   :  { %10 = vsyncpa [#allocation4], 0  ;;  %s1255_s12 = smov [#allocation5]   ;;  %s1161_s16 = scalar_lea.hbm %s1431_s1, 8192 }
   0x3   :  { %s28_s13 = sshll.u32 %s1255_s12, 4  ;;  %p1162_p0 = scmp.ne.s32.totalorder %s1431_s1, %s1161_s16  ;;  %s29_s13 = int_to_ptr.vmem [resolvable:$true] %s28_s13 }
   0x4   :  { %p1165_p1 = scmp.lt.u32.totalorder %s1161_s16, %s1431_s1 }
   0x6   :  { %p1167_p2 = pnand %p1165_p1, %p1162_p0 }
   0x8   :  { %1170 = shalt.err (!%p1167_p2)
}
   0x9   :  { %s1171_s21 = scalar_lea.vmem %s29_s13, 8192  ;;  %p1176_p4 = scmp.lt.s32.totalorder %s29_s13, %s29_s13 }
   0xa   :  { %p1172_p3 = scmp.ne.s32.totalorder %s29_s13, %s1171_s21  ;;  %p1177_p5 = scmp.lt.s32.totalorder %s1171_s21, %s1171_s21 }
   0xc   :  { %p1178_p6 = por %p1177_p5, %p1176_p4 }
   0xe   :  { %p1179_p7 = pnand %p1178_p6, %p1172_p3 }
  0x10   :  { %1182 = shalt.err (!%p1179_p7)
}
  0x11   :  { %s1256_s22 = smov 256   ;;  %s1257_s23 = smov 16  }
  0x12   :  { %34 = dma.hbm_to_vmem [thread:$0]  %s1431_s1, 8192, %s29_s13, [#allocation6], %s1256_s22, %s1256_s22, %s1257_s23  }
  0x13   :  { %s1258_s26 = smov [#allocation2]   ;;  %s1183_s30 = scalar_lea.hbm %s1430_s0, 640 }
  0x14   :  { %s16_s27 = sshll.u32 %s1258_s26, 4  ;;  %p1184_p8 = scmp.ne.s32.totalorder %s1430_s0, %s1183_s30  ;;  %s17_s27 = int_to_ptr.vmem [resolvable:$true] %s16_s27 }
  0x15   :  { %p1187_p9 = scmp.lt.u32.totalorder %s1183_s30, %s1430_s0 }
  0x17   :  { %p1189_p10 = pnand %p1187_p9, %p1184_p8 }
  0x19   :  { %1192 = shalt.err (!%p1189_p10)
}
  0x1a   :  { %s1193_s8 = scalar_lea.vmem %s17_s27, 640  ;;  %p1198_p12 = scmp.lt.s32.totalorder %s17_s27, %s17_s27 }
  0x1b   :  { %p1194_p11 = scmp.ne.s32.totalorder %s17_s27, %s1193_s8  ;;  %p1199_p13 = scmp.lt.s32.totalorder %s1193_s8, %s1193_s8 }
  0x1d   :  { %p1200_p0 = por %p1199_p13, %p1198_p12 }
  0x1f   :  { %p1201_p1 = pnand %p1200_p0, %p1194_p11 }
  0x21   :  { %1204 = shalt.err (!%p1201_p1)
}
  0x22   :  { %s1259_s1 = smov 128   ;;  %s1260_s9 = smov 8  }
  0x23   :  { %22 = dma.hbm_to_vmem [thread:$0]  %s1430_s0, 640, %s17_s27, [#allocation3], %s1259_s1, %s1259_s1, %s1260_s9  }
  0x24   :  { %s1261_s12 = smov [#allocation7]   ;;  %s1205_s16 = scalar_lea.hbm %s1432_s2, 4096 }
  0x25   :  { %s40_s13 = sshll.u32 %s1261_s12, 4  ;;  %p1206_p2 = scmp.ne.s32.totalorder %s1432_s2, %s1205_s16  ;;  %s41_s13 = int_to_ptr.vmem [resolvable:$true] %s40_s13 }
  0x26   :  { %p1209_p3 = scmp.lt.u32.totalorder %s1205_s16, %s1432_s2 }
  0x28   :  { %p1211_p4 = pnand %p1209_p3, %p1206_p2 }
  0x2a   :  { %1214 = shalt.err (!%p1211_p4)
}
  0x2b   :  { %s1215_s21 = scalar_lea.vmem %s41_s13, 4096  ;;  %p1220_p6 = scmp.lt.s32.totalorder %s41_s13, %s41_s13 }
  0x2c   :  { %p1216_p5 = scmp.ne.s32.totalorder %s41_s13, %s1215_s21  ;;  %p1221_p7 = scmp.lt.s32.totalorder %s1215_s21, %s1215_s21 }
  0x2e   :  { %p1222_p8 = por %p1221_p7, %p1220_p6 }
  0x30   :  { %p1223_p9 = pnand %p1222_p8, %p1216_p5 }
  0x32   :  { %1226 = shalt.err (!%p1223_p9)
}
  0x33   :  { %46 = dma.hbm_to_vmem [thread:$0]  %s1432_s2, 4096, %s41_s13, [#allocation6], %s1259_s1, %s1259_s1, %s1260_s9  }
  0x34   :  { %1249 = dma.done.wait [#allocation3], 640  }
  0x35   :  { %1250 = vsyncadd [#allocation3], 4294966656 }
  0x36   :  { %1251 = dma.done.wait [#allocation6], 12288  }
  0x37   :  { %1252 = vsyncadd [#allocation6], 4294955008  ;;  %v1027_v0 = vld [vmem:[#allocation5 + $0x4] ss:$16 sps:$4 sm:$0xff]   ;;  %v1029_v1 = vld [vmem:[#allocation5 + $0xc] ss:$16 sps:$4 sm:$0xff]  }
  0x38   :  { %472 = vmatprep.subr.bf16.mxu0 %v1027_v0  ;;  %v1031_v2 = vld [vmem:[#allocation5] ss:$16 sps:$4 sm:$0xff]   ;;  %v1032_v3 = vld [vmem:[#allocation5 + $0x8] ss:$16 sps:$4 sm:$0xff]   ;;  %533 = vmatprep.subr.bf16.mxu1 %v1029_v1  ;;  %v1033_v4 = vld [vmem:[#allocation5 + $0x24] ss:$16 sps:$4 sm:$0xff]  }
  0x39   :  { %473 = vmatpush1.bf16.msra.mxu0 %v1031_v2  ;;  %534 = vmatpush1.bf16.msra.mxu1 %v1032_v3  ;;  %v1035_v5 = vld [vmem:[#allocation5 + $0x2c] ss:$16 sps:$4 sm:$0xff]   ;;  %v1037_v6 = vld [vmem:[#allocation5 + $0x20] ss:$16 sps:$4 sm:$0xff]   ;;  %v1038_v7 = vld [vmem:[#allocation5 + $0x28] ss:$16 sps:$4 sm:$0xff]  }
  0x3a   :  { %474 = vmatprep.subr.bf16.mxu0 %v1033_v4  ;;  %535 = vmatprep.subr.bf16.mxu1 %v1035_v5  ;;  %v1039_v8 = vld [vmem:[#allocation5 + $0x44] ss:$16 sps:$4 sm:$0xff]   ;;  %v1041_v9 = vld [vmem:[#allocation5 + $0x4c] ss:$16 sps:$4 sm:$0xff]   ;;  %v1043_v10 = vld [vmem:[#allocation5 + $0x40] ss:$16 sps:$4 sm:$0xff]  }
  0x3b   :  { %v1044_v11 = vld [vmem:[#allocation5 + $0x48] ss:$16 sps:$4 sm:$0xff]   ;;  %v1045_v12 = vld [vmem:[#allocation5 + $0x64] ss:$16 sps:$4 sm:$0xff]   ;;  %v1047_v13 = vld [vmem:[#allocation5 + $0x6c] ss:$16 sps:$4 sm:$0xff]  }
  0x3c   :  { %v1049_v14 = vld [vmem:[#allocation5 + $0x60] ss:$16 sps:$4 sm:$0xff]   ;;  %v1050_v15 = vld [vmem:[#allocation5 + $0x68] ss:$16 sps:$4 sm:$0xff]   ;;  %v1051_v16 = vld [vmem:[#allocation5 + $0x84] ss:$16 sps:$4 sm:$0xff]  }
  0x3d   :  { %475 = vmatpush1.bf16.msra.mxu0 %v1037_v6  ;;  %536 = vmatpush1.bf16.msra.mxu1 %v1038_v7  ;;  %v1053_v17 = vld [vmem:[#allocation5 + $0x8c] ss:$16 sps:$4 sm:$0xff]   ;;  %v1055_v18 = vld [vmem:[#allocation5 + $0x80] ss:$16 sps:$4 sm:$0xff]   ;;  %v1056_v19 = vld [vmem:[#allocation5 + $0x88] ss:$16 sps:$4 sm:$0xff]  }
  0x3e   :  { %476 = vmatprep.subr.bf16.mxu0 %v1039_v8  ;;  %537 = vmatprep.subr.bf16.mxu1 %v1041_v9  ;;  %v1057_v20 = vld [vmem:[#allocation5 + $0xa4] ss:$16 sps:$4 sm:$0xff]   ;;  %v1059_v21 = vld [vmem:[#allocation5 + $0xac] ss:$16 sps:$4 sm:$0xff]   ;;  %v1061_v22 = vld [vmem:[#allocation5 + $0xa0] ss:$16 sps:$4 sm:$0xff]  }
  0x3f   :  { %v1062_v23 = vld [vmem:[#allocation5 + $0xa8] ss:$16 sps:$4 sm:$0xff]   ;;  %v1063_v24 = vld [vmem:[#allocation5 + $0xc4] ss:$16 sps:$4 sm:$0xff]   ;;  %v1065_v25 = vld [vmem:[#allocation5 + $0xcc] ss:$16 sps:$4 sm:$0xff]  }
  0x40   :  { %v1067_v26 = vld [vmem:[#allocation5 + $0xc0] ss:$16 sps:$4 sm:$0xff]   ;;  %v1068_v27 = vld [vmem:[#allocation5 + $0xc8] ss:$16 sps:$4 sm:$0xff]   ;;  %v1069_v28 = vld [vmem:[#allocation5 + $0xe4] ss:$16 sps:$4 sm:$0xff]  }
  0x41   :  { %477 = vmatpush1.bf16.msra.mxu0 %v1043_v10  ;;  %538 = vmatpush1.bf16.msra.mxu1 %v1044_v11  ;;  %v1071_v29 = vld [vmem:[#allocation5 + $0xec] ss:$16 sps:$4 sm:$0xff]   ;;  %v1073_v30 = vld [vmem:[#allocation5 + $0xe0] ss:$16 sps:$4 sm:$0xff]   ;;  %v1074_v31 = vld [vmem:[#allocation5 + $0xe8] ss:$16 sps:$4 sm:$0xff]  }
  0x42   :  { %478 = vmatprep.subr.bf16.mxu0 %v1045_v12  ;;  %539 = vmatprep.subr.bf16.mxu1 %v1047_v13  ;;  %v1075_v32 = vld [vmem:[#allocation5 + $0x104] ss:$16 sps:$4 sm:$0xff]   ;;  %v1077_v33 = vld [vmem:[#allocation5 + $0x10c] ss:$16 sps:$4 sm:$0xff]   ;;  %v1079_v34 = vld [vmem:[#allocation5 + $0x100] ss:$16 sps:$4 sm:$0xff]  }
  0x43   :  { %v1080_v35 = vld [vmem:[#allocation5 + $0x108] ss:$16 sps:$4 sm:$0xff]   ;;  %v1081_v36 = vld [vmem:[#allocation5 + $0x124] ss:$16 sps:$4 sm:$0xff]   ;;  %v1083_v37 = vld [vmem:[#allocation5 + $0x12c] ss:$16 sps:$4 sm:$0xff]  }
  0x44   :  { %v1085_v38 = vld [vmem:[#allocation5 + $0x120] ss:$16 sps:$4 sm:$0xff]   ;;  %v1086_v39 = vld [vmem:[#allocation5 + $0x128] ss:$16 sps:$4 sm:$0xff]   ;;  %v1087_v40 = vld [vmem:[#allocation5 + $0x144] ss:$16 sps:$4 sm:$0xff]  }
  0x45   :  { %479 = vmatpush1.bf16.msra.mxu0 %v1049_v14  ;;  %540 = vmatpush1.bf16.msra.mxu1 %v1050_v15  ;;  %v1089_v41 = vld [vmem:[#allocation5 + $0x14c] ss:$16 sps:$4 sm:$0xff]   ;;  %v1091_v42 = vld [vmem:[#allocation5 + $0x140] ss:$16 sps:$4 sm:$0xff]   ;;  %v1092_v43 = vld [vmem:[#allocation5 + $0x148] ss:$16 sps:$4 sm:$0xff]  }
  0x46   :  { %480 = vmatprep.subr.bf16.mxu0 %v1051_v16  ;;  %541 = vmatprep.subr.bf16.mxu1 %v1053_v17  ;;  %v1093_v44 = vld [vmem:[#allocation5 + $0x164] ss:$16 sps:$4 sm:$0xff]   ;;  %v1095_v45 = vld [vmem:[#allocation5 + $0x16c] ss:$16 sps:$4 sm:$0xff]   ;;  %v1097_v46 = vld [vmem:[#allocation5 + $0x160] ss:$16 sps:$4 sm:$0xff]  }
  0x47   :  { %v1125_v47 = vld [vmem:[#allocation2 + $0x4] ss:$8 sps:$4 sm:$0xff]   ;;  %v1098_v48 = vld [vmem:[#allocation5 + $0x168] ss:$16 sps:$4 sm:$0xff]   ;;  %v1103_v51 = vld [vmem:[#allocation5 + $0x180] ss:$16 sps:$4 sm:$0xff]  }
  0x48   :  { %v1099_v49 = vld [vmem:[#allocation5 + $0x184] ss:$16 sps:$4 sm:$0xff]   ;;  %v1101_v50 = vld [vmem:[#allocation5 + $0x18c] ss:$16 sps:$4 sm:$0xff]   ;;  %504 = vmatprep.mubr.bf16.mxu0 %v1125_v47  ;;  %565 = vmatprep.mubr.bf16.mxu1 %v1125_v47  ;;  %v1104_v52 = vld [vmem:[#allocation5 + $0x188] ss:$16 sps:$4 sm:$0xff]  }
  0x49   :  { %481 = vmatpush1.bf16.msra.mxu0 %v1055_v18  ;;  %542 = vmatpush1.bf16.msra.mxu1 %v1056_v19  ;;  %v1105_v53 = vld [vmem:[#allocation5 + $0x1a4] ss:$16 sps:$4 sm:$0xff]   ;;  %v1107_v54 = vld [vmem:[#allocation5 + $0x1ac] ss:$16 sps:$4 sm:$0xff]   ;;  %v1109_v55 = vld [vmem:[#allocation5 + $0x1a0] ss:$16 sps:$4 sm:$0xff]  }
  0x4a   :  { %482 = vmatprep.subr.bf16.mxu0 %v1057_v20  ;;  %543 = vmatprep.subr.bf16.mxu1 %v1059_v21  ;;  %v1110_v56 = vld [vmem:[#allocation5 + $0x1a8] ss:$16 sps:$4 sm:$0xff]   ;;  %v1111_v57 = vld [vmem:[#allocation5 + $0x1c4] ss:$16 sps:$4 sm:$0xff]   ;;  %v1113_v58 = vld [vmem:[#allocation5 + $0x1cc] ss:$16 sps:$4 sm:$0xff]  }
  0x4b   :  { %v1115_v59 = vld [vmem:[#allocation5 + $0x1c0] ss:$16 sps:$4 sm:$0xff]   ;;  %v1116_v60 = vld [vmem:[#allocation5 + $0x1c8] ss:$16 sps:$4 sm:$0xff]   ;;  %v1117_v61 = vld [vmem:[#allocation5 + $0x1e4] ss:$16 sps:$4 sm:$0xff]  }
  0x4c   :  { %v1119_v62 = vld [vmem:[#allocation5 + $0x1ec] ss:$16 sps:$4 sm:$0xff]   ;;  %v710_v63 = vld [vmem:[#allocation7 + $0x80] sm:$0xff]  ;;  %v1122_v2 = vld [vmem:[#allocation5 + $0x1e8] ss:$16 sps:$4 sm:$0xff]   ;;  %s1262_s2 = smov [#allocation8]  }
  0x4d   :  { %483 = vmatpush1.bf16.msra.mxu0 %v1061_v22  ;;  %544 = vmatpush1.bf16.msra.mxu1 %v1062_v23  ;;  %v711_v0 = vld [vmem:[#allocation7 + $0x88] sm:$0xff]  ;;  %v1121_v1 = vld [vmem:[#allocation5 + $0x1e0] ss:$16 sps:$4 sm:$0xff]   ;;  %v713_v8 = vld [vmem:[#allocation7 + $0x98] sm:$0xff]  ;;  %s841_s23 = sshll.u32 %s1262_s2, 4  ;;  %s842_s23 = int_to_ptr.vmem [resolvable:$true] %s841_s23 }
  0x4e   :  { %484 = vmatprep.subr.bf16.mxu0 %v1063_v24  ;;  %545 = vmatprep.subr.bf16.mxu1 %v1065_v25  ;;  %v971_v3 = vpack.c.bf16 %v711_v0, %v710_v63  ;;  %v694_v4 = vld [vmem:[#allocation7] sm:$0xff]  ;;  %v695_v5 = vld [vmem:[#allocation7 + $0x8] sm:$0xff]  ;;  %v712_v7 = vld [vmem:[#allocation7 + $0x90] sm:$0xff]  ;;  %s1227_s24 = scalar_lea.vmem %s842_s23, 640  ;;  %p1232_p11 = scmp.lt.s32.totalorder %s842_s23, %s842_s23 }
  0x4f   :  { %v1123_v6 = vld [vmem:[#allocation2] ss:$8 sps:$4 sm:$0xff]   ;;  %v1126_v9 = vld [vmem:[#allocation2 + $0x14] ss:$8 sps:$4 sm:$0xff]   ;;  %v973_v10 = vpack.c.bf16 %v695_v5, %v694_v4  ;;  %v975_v11 = vpack.c.bf16 %v713_v8, %v712_v7  ;;  %v1128_v21 = vld [vmem:[#allocation2 + $0x10] ss:$8 sps:$4 sm:$0xff]   ;;  %p1228_p10 = scmp.ne.s32.totalorder %s842_s23, %s1227_s24  ;;  %p1233_p12 = scmp.lt.s32.totalorder %s1227_s24, %s1227_s24 }
  0x50   :  { %v696_v12 = vld [vmem:[#allocation7 + $0x10] sm:$0xff]  ;;  %v697_v13 = vld [vmem:[#allocation7 + $0x18] sm:$0xff]  ;;  %v714_v14 = vld [vmem:[#allocation7 + $0xa0] sm:$0xff] }
  0x51   :  { %485 = vmatpush1.bf16.msra.mxu0 %v1067_v26  ;;  %546 = vmatpush1.bf16.msra.mxu1 %v1068_v27  ;;  %v715_v15 = vld [vmem:[#allocation7 + $0xa8] sm:$0xff]  ;;  %v60_v16 = vld [vmem:[#allocation2 + $0x20] sm:$0xff]  ;;  %v977_v17 = vpack.c.bf16 %v697_v13, %v696_v12  ;;  %v698_v19 = vld [vmem:[#allocation7 + $0x20] sm:$0xff]  ;;  %p1234_p13 = por %p1233_p12, %p1232_p11 }
  0x52   :  { %486 = vmatprep.subr.bf16.mxu0 %v1069_v28  ;;  %547 = vmatprep.subr.bf16.mxu1 %v1071_v29  ;;  %v979_v18 = vpack.c.bf16 %v715_v15, %v714_v14  ;;  %v699_v20 = vld [vmem:[#allocation7 + $0x28] sm:$0xff]  ;;  %v859_v22 = vcombine.high %v60_v16, %v60_v16  ;;  %v858_v24 = vcombine.low %v60_v16, %v60_v16  ;;  %v716_v25 = vld [vmem:[#allocation7 + $0xb0] sm:$0xff]  ;;  %v717_v26 = vld [vmem:[#allocation7 + $0xb8] sm:$0xff] }
  0x53   :  { %v981_v23 = vpack.c.bf16 %v699_v20, %v698_v19  ;;  %v983_v27 = vpack.c.bf16 %v717_v26, %v716_v25  ;;  %v700_v28 = vld [vmem:[#allocation7 + $0x30] sm:$0xff]  ;;  %v701_v29 = vld [vmem:[#allocation7 + $0x38] sm:$0xff]  ;;  %v707_v47 = vld [vmem:[#allocation7 + $0x68] sm:$0xff]  ;;  %p1235_p0 = pnand %p1234_p13, %p1228_p10 }
  0x55   :  { %487 = vmatpush1.bf16.msra.mxu0 %v1073_v30  ;;  %548 = vmatpush1.bf16.msra.mxu1 %v1074_v31  ;;  %v985_v30 = vpack.c.bf16 %v701_v29, %v700_v28  ;;  %v718_v31 = vld [vmem:[#allocation7 + $0xc0] sm:$0xff] }
  0x56   :  { %488 = vmatprep.subr.bf16.mxu0 %v1075_v32  ;;  %549 = vmatprep.subr.bf16.mxu1 %v1077_v33  ;;  %v719_v32 = vld [vmem:[#allocation7 + $0xc8] sm:$0xff] }
  0x57   :  { %v987_v33 = vpack.c.bf16 %v719_v32, %v718_v31 }
  0x59   :  { %489 = vmatpush1.bf16.msra.mxu0 %v1079_v34  ;;  %550 = vmatpush1.bf16.msra.mxu1 %v1080_v35  ;;  %v702_v34 = vld [vmem:[#allocation7 + $0x40] sm:$0xff]  ;;  %v703_v35 = vld [vmem:[#allocation7 + $0x48] sm:$0xff] }
  0x5a   :  { %490 = vmatprep.subr.bf16.mxu0 %v1081_v36  ;;  %551 = vmatprep.subr.bf16.mxu1 %v1083_v37  ;;  %v989_v36 = vpack.c.bf16 %v703_v35, %v702_v34  ;;  %v720_v37 = vld [vmem:[#allocation7 + $0xd0] sm:$0xff] }
  0x5d   :  { %491 = vmatpush1.bf16.msra.mxu0 %v1085_v38  ;;  %552 = vmatpush1.bf16.msra.mxu1 %v1086_v39  ;;  %v721_v38 = vld [vmem:[#allocation7 + $0xd8] sm:$0xff] }
  0x5e   :  { %492 = vmatprep.subr.bf16.mxu0 %v1087_v40  ;;  %553 = vmatprep.subr.bf16.mxu1 %v1089_v41  ;;  %v991_v39 = vpack.c.bf16 %v721_v38, %v720_v37  ;;  %v704_v40 = vld [vmem:[#allocation7 + $0x50] sm:$0xff]  ;;  %v705_v41 = vld [vmem:[#allocation7 + $0x58] sm:$0xff] }
  0x61   :  { %493 = vmatpush1.bf16.msra.mxu0 %v1091_v42  ;;  %554 = vmatpush1.bf16.msra.mxu1 %v1092_v43  ;;  %v993_v42 = vpack.c.bf16 %v705_v41, %v704_v40  ;;  %v722_v43 = vld [vmem:[#allocation7 + $0xe0] sm:$0xff] }
  0x62   :  { %494 = vmatprep.subr.bf16.mxu0 %v1093_v44  ;;  %555 = vmatprep.subr.bf16.mxu1 %v1095_v45  ;;  %v723_v44 = vld [vmem:[#allocation7 + $0xe8] sm:$0xff] }
  0x63   :  { %v995_v45 = vpack.c.bf16 %v723_v44, %v722_v43 }
  0x65   :  { %495 = vmatpush1.bf16.msra.mxu0 %v1097_v46  ;;  %556 = vmatpush1.bf16.msra.mxu1 %v1098_v48  ;;  %v706_v46 = vld [vmem:[#allocation7 + $0x60] sm:$0xff] }
  0x66   :  { %496 = vmatprep.subr.bf16.mxu0 %v1099_v49  ;;  %557 = vmatprep.subr.bf16.mxu1 %v1101_v50  ;;  %v997_v48 = vpack.c.bf16 %v707_v47, %v706_v46  ;;  %v724_v49 = vld [vmem:[#allocation7 + $0xf0] sm:$0xff]  ;;  %v725_v50 = vld [vmem:[#allocation7 + $0xf8] sm:$0xff] }
  0x69   :  { %497 = vmatpush1.bf16.msra.mxu0 %v1103_v51  ;;  %558 = vmatpush1.bf16.msra.mxu1 %v1104_v52  ;;  %v999_v51 = vpack.c.bf16 %v725_v50, %v724_v49  ;;  %v708_v52 = vld [vmem:[#allocation7 + $0x70] sm:$0xff] }
  0x6a   :  { %498 = vmatprep.subr.bf16.mxu0 %v1105_v53  ;;  %559 = vmatprep.subr.bf16.mxu1 %v1107_v54  ;;  %v709_v53 = vld [vmem:[#allocation7 + $0x78] sm:$0xff] }
  0x6b   :  { %v1001_v54 = vpack.c.bf16 %v709_v53, %v708_v52 }
  0x6d   :  { %499 = vmatpush1.bf16.msra.mxu0 %v1109_v55  ;;  %560 = vmatpush1.bf16.msra.mxu1 %v1110_v56 }
  0x6e   :  { %500 = vmatprep.subr.bf16.mxu0 %v1111_v57  ;;  %561 = vmatprep.subr.bf16.mxu1 %v1113_v58 }
  0x71   :  { %501 = vmatpush1.bf16.msra.mxu0 %v1115_v59  ;;  %562 = vmatpush1.bf16.msra.mxu1 %v1116_v60 }
  0x72   :  { %502 = vmatprep.subr.bf16.mxu0 %v1117_v61  ;;  %563 = vmatprep.subr.bf16.mxu1 %v1119_v62 }
  0x75   :  { %503 = vmatpush1.bf16.msra.mxu0 %v1121_v1  ;;  %564 = vmatpush1.bf16.msra.mxu1 %v1122_v2 }
  0x76   :  { %972 = vmatprep.subr.bf16.mxu0 %v971_v3  ;;  %1003 = vmatprep.subr.bf16.mxu1 %v971_v3 }
  0x78   :  { %505 = vmatmul.mubr.bf16.vlgmr.msra.gmra.mrb[0].mxu0 %v1123_v6  ;;  %566 = vmatmul.mubr.bf16.vlgmr.msra.gmra.mrb[0].mxu1 %v1123_v6 }
  0x79   :  { %514 = vmatprep.mubr.bf16.mxu0 %v1126_v9  ;;  %575 = vmatprep.mubr.bf16.mxu1 %v1126_v9 }
  0x7a   :  { %974 = vmatpush3.bf16.msra.mxu0 %v973_v10  ;;  %1011 = vmatpush3.bf16.msra.mxu1 %v973_v10 }
  0x7b   :  { %976 = vmatprep.subr.bf16.mxu0 %v975_v11  ;;  %1004 = vmatprep.subr.bf16.mxu1 %v975_v11 }
  0x7e   :  { %978 = vmatpush3.bf16.msra.mxu0 %v977_v17  ;;  %1012 = vmatpush3.bf16.msra.mxu1 %v977_v17 }
  0x7f   :  { %980 = vmatprep.subr.bf16.mxu0 %v979_v18  ;;  %1005 = vmatprep.subr.bf16.mxu1 %v979_v18 }
  0x80   :  { %515 = vmatmul.mubr.bf16.gmra.mrb[4].mxu0 %v1128_v21  ;;  %576 = vmatmul.mubr.bf16.gmra.mrb[4].mxu1 %v1128_v21 }
  0x81   :  { %524 = vmatprep.mubr.bf16.mxu0 %v859_v22  ;;  %585 = vmatprep.mubr.bf16.mxu1 %v859_v22 }
  0x82   :  { %982 = vmatpush3.bf16.msra.mxu0 %v981_v23  ;;  %1013 = vmatpush3.bf16.msra.mxu1 %v981_v23 }
  0x83   :  { %984 = vmatprep.subr.bf16.mxu0 %v983_v27  ;;  %1006 = vmatprep.subr.bf16.mxu1 %v983_v27 }
  0x86   :  { %986 = vmatpush3.bf16.msra.mxu0 %v985_v30  ;;  %1014 = vmatpush3.bf16.msra.mxu1 %v985_v30 }
  0x87   :  { %988 = vmatprep.subr.bf16.mxu0 %v987_v33  ;;  %1007 = vmatprep.subr.bf16.mxu1 %v987_v33 }
  0x88   :  { %525 = vmatmul.mubr.bf16.gmra.mrb[8].mxu0 %v858_v24  ;;  %586 = vmatmul.mubr.bf16.gmra.mrb[8].mxu1 %v858_v24 }
  0x8a   :  { %990 = vmatpush3.bf16.msra.mxu0 %v989_v36  ;;  %1015 = vmatpush3.bf16.msra.mxu1 %v989_v36 }
  0x8b   :  { %992 = vmatprep.subr.bf16.mxu0 %v991_v39  ;;  %1008 = vmatprep.subr.bf16.mxu1 %v991_v39 }
  0x8e   :  { %994 = vmatpush3.bf16.msra.mxu0 %v993_v42  ;;  %1016 = vmatpush3.bf16.msra.mxu1 %v993_v42 }
  0x8f   :  { %996 = vmatprep.subr.bf16.mxu0 %v995_v45  ;;  %1009 = vmatprep.subr.bf16.mxu1 %v995_v45 }
  0x92   :  { %998 = vmatpush3.bf16.msra.mxu0 %v997_v48  ;;  %1017 = vmatpush3.bf16.msra.mxu1 %v997_v48 }
  0x93   :  { %1000 = vmatprep.subr.bf16.mxu0 %v999_v51  ;;  %1010 = vmatprep.subr.bf16.mxu1 %v999_v51 }
  0x96   :  { %1002 = vmatpush3.bf16.msra.mxu0 %v1001_v54  ;;  %1018 = vmatpush3.bf16.msra.mxu1 %v1001_v54 }
 0x14b   :  { %v506_v55 = vpop.f32.mrb[0].mxu0  ;;  %v567_v56 = vpop.f32.mrb[0].mxu1 }
 0x14c   :  { %v594_v57 = vmul.f32 %v506_v55, %v506_v55  ;;  %v604_v58 = vmul.f32 %v567_v56, %v567_v56  ;;  %v508_v59 = vpop.f32.mrb[1].mxu0  ;;  %v569_v60 = vpop.f32.mrb[1].mxu1 }
 0x14d   :  { %v595_v61 = vmul.f32 %v508_v59, %v508_v59  ;;  %v605_v62 = vmul.f32 %v569_v60, %v569_v60  ;;  %v510_v63 = vpop.f32.mrb[2].mxu0  ;;  %v571_v0 = vpop.f32.mrb[2].mxu1 }
 0x14e   :  { %v1325_v1 = vadd.f32 %v604_v58, %v594_v57  ;;  %v596_v2 = vmul.f32 %v510_v63, %v510_v63  ;;  %v606_v3 = vmul.f32 %v571_v0, %v571_v0  ;;  %v512_v4 = vpop.f32.mrb[3].mxu0  ;;  %v573_v5 = vpop.f32.mrb[3].mxu1 }
 0x14f   :  { %v1327_v6 = vadd.f32 %v605_v62, %v595_v61  ;;  %v597_v7 = vmul.f32 %v512_v4, %v512_v4  ;;  %v607_v8 = vmul.f32 %v573_v5, %v573_v5 }
 0x150   :  { %1131 = vrsqrt.f32 %v1325_v1  ;;  %v1330_v9 = vadd.f32 %v606_v3, %v596_v2  ;;  %vm626_vm1 = vcmp.eq.f32.partialorder %v1325_v1, inf  ;;  %vm628_vm2 = vcmp.eq.f32.partialorder %v1325_v1, 0.0 }
 0x151   :  { %v1332_v10 = vadd.f32 %v607_v8, %v597_v7  ;;  %1133 = vrsqrt.f32 %v1327_v6  ;;  %vm633_vm0 = vcmp.eq.f32.partialorder %v1327_v6, inf  ;;  %vm635_vm3 = vcmp.eq.f32.partialorder %v1327_v6, 0.0 }
 0x152   :  { %1135 = vrsqrt.f32 %v1330_v9  ;;  %v636_v35 = vand.u32 2147483648, %v1327_v6  ;;  %v629_v43 = vand.u32 2147483648, %v1325_v1  ;;  %vm640_vm4 = vcmp.eq.f32.partialorder %v1330_v9, inf }
 0x153   :  { %v516_v11 = vpop.f32.mrb[4].mxu0  ;;  %v577_v12 = vpop.f32.mrb[4].mxu1  ;;  %1137 = vrsqrt.f32 %v1332_v10  ;;  %vm647_vm5 = vcmp.eq.f32.partialorder %v1332_v10, inf  ;;  %v650_v58 = vand.u32 2147483648, %v1332_v10  ;;  %vm649_vm6 = vcmp.eq.f32.partialorder %v1332_v10, 0.0 }
 0x154   :  { %v598_v13 = vmul.f32 %v516_v11, %v516_v11  ;;  %v608_v14 = vmul.f32 %v577_v12, %v577_v12  ;;  %v518_v15 = vpop.f32.mrb[5].mxu0  ;;  %v579_v16 = vpop.f32.mrb[5].mxu1  ;;  %v643_v0 = vand.u32 2147483648, %v1330_v9  ;;  %vm642_vm7 = vcmp.eq.f32.partialorder %v1330_v9, 0.0 }
 0x155   :  { %v599_v17 = vmul.f32 %v518_v15, %v518_v15  ;;  %v609_v18 = vmul.f32 %v579_v16, %v579_v16  ;;  %v520_v19 = vpop.f32.mrb[6].mxu0  ;;  %v581_v20 = vpop.f32.mrb[6].mxu1 }
 0x156   :  { %v1337_v21 = vadd.f32 %v608_v14, %v598_v13  ;;  %v600_v22 = vmul.f32 %v520_v19, %v520_v19  ;;  %v610_v23 = vmul.f32 %v581_v20, %v581_v20  ;;  %v522_v24 = vpop.f32.mrb[7].mxu0  ;;  %v583_v25 = vpop.f32.mrb[7].mxu1 }
 0x157   :  { %v1339_v26 = vadd.f32 %v609_v18, %v599_v17  ;;  %v601_v27 = vmul.f32 %v522_v24, %v522_v24  ;;  %v611_v28 = vmul.f32 %v583_v25, %v583_v25 }
 0x158   :  { %v1341_v29 = vadd.f32 %v610_v23, %v600_v22  ;;  %1139 = vrsqrt.f32 %v1337_v21  ;;  %vm654_vm8 = vcmp.eq.f32.partialorder %v1337_v21, inf  ;;  %vm656_vm10 = vcmp.eq.f32.partialorder %v1337_v21, 0.0 }
 0x159   :  { %v1344_v30 = vadd.f32 %v611_v28, %v601_v27  ;;  %1141 = vrsqrt.f32 %v1339_v26  ;;  %vm661_vm9 = vcmp.eq.f32.partialorder %v1339_v26, inf  ;;  %vm663_vm11 = vcmp.eq.f32.partialorder %v1339_v26, 0.0 }
 0x15a   :  { %v1132_v31 = vpop.eup %1131  ;;  %1143 = vrsqrt.f32 %v1341_v29  ;;  %v664_v7 = vand.u32 2147483648, %v1339_v26  ;;  %v657_v11 = vand.u32 2147483648, %v1337_v21  ;;  %vm668_vm12 = vcmp.eq.f32.partialorder %v1341_v29, inf }
 0x15b   :  { %v1134_v32 = vpop.eup %1133  ;;  %v526_v33 = vpop.f32.mrb[8].mxu0  ;;  %v625_v36 = vmul.f32 %v1132_v31, %v1325_v1  ;;  %1145 = vrsqrt.f32 %v1344_v30  ;;  %vm675_vm13 = vcmp.eq.f32.partialorder %v1344_v30, inf  ;;  %v678_v14 = vand.u32 2147483648, %v1344_v30 }
 0x15c   :  { %v587_v34 = vpop.f32.mrb[8].mxu1  ;;  %v1136_v37 = vpop.eup %1135  ;;  %v602_v38 = vmul.f32 %v526_v33, %v526_v33  ;;  %v632_v42 = vmul.f32 %v1134_v32, %v1327_v6  ;;  %vm677_vm14 = vcmp.eq.f32.partialorder %v1344_v30, 0.0  ;;  %v671_v18 = vand.u32 2147483648, %v1341_v29 }
 0x15d   :  { %v612_v39 = vmul.f32 %v587_v34, %v587_v34  ;;  %v528_v40 = vpop.f32.mrb[9].mxu0  ;;  %v589_v41 = vpop.f32.mrb[9].mxu1  ;;  %v627_v49 = vsel %vm626_vm1, %v1325_v1, %v625_v36  ;;  %v639_v50 = vmul.f32 %v1136_v37, %v1330_v9  ;;  %vm670_vm15 = vcmp.eq.f32.partialorder %v1341_v29, 0.0 }
 0x15e   :  { %v1138_v44 = vpop.eup %1137  ;;  %v603_v45 = vmul.f32 %v528_v40, %v528_v40  ;;  %v613_v46 = vmul.f32 %v589_v41, %v589_v41  ;;  %v530_v47 = vpop.f32.mrb[10].mxu0  ;;  %v634_v54 = vsel %vm633_vm0, %v1327_v6, %v632_v42  ;;  %v630_v59 = vsel %vm628_vm2, %v629_v43, %v627_v49 }
 0x15f   :  { %v591_v48 = vpop.f32.mrb[10].mxu1  ;;  %v1361_v51 = vadd.f32 %v612_v39, %v602_v38  ;;  %v531_v52 = vpop.f32.mrb[11].mxu0  ;;  %v646_v55 = vmul.f32 %v1138_v44, %v1332_v10  ;;  %v637_v57 = vsel %vm635_vm3, %v636_v35, %v634_v54  ;;  %v641_v62 = vsel %vm640_vm4, %v1330_v9, %v639_v50 }
 0x160   :  { %v592_v53 = vpop.f32.mrb[11].mxu1  ;;  %v1368_v56 = vadd.f32 %v613_v46, %v603_v45  ;;  %790 = vmatprep.mubr.f32.mxu0 %v637_v57  ;;  %v644_v4 = vsel %vm642_vm7, %v643_v0, %v641_v62 }
 0x161   :  { %v648_v60 = vsel %vm647_vm5, %v1332_v10, %v646_v55  ;;  %1147 = vrsqrt.f32 %v1361_v51  ;;  %791 = vmatmul.mubr.f32.vlgmr.msra.gmra.mrb[12].mxu0 %v630_v59  ;;  %vm682_vm0 = vcmp.eq.f32.partialorder %v1361_v51, inf  ;;  %v685_v28 = vand.u32 2147483648, %v1361_v51 }
 0x162   :  { %v651_v61 = vsel %vm649_vm6, %v650_v58, %v648_v60  ;;  %1149 = vrsqrt.f32 %v1368_v56  ;;  %v1140_v63 = vpop.eup %1139  ;;  %vm689_vm1 = vcmp.eq.f32.partialorder %v1368_v56, inf  ;;  %v692_v25 = vand.u32 2147483648, %v1368_v56 }
 0x163   :  { %795 = vmatprep.mubr.f32.mxu0 %v651_v61  ;;  %v1142_v2 = vpop.eup %1141  ;;  %v653_v1 = vmul.f32 %v1140_v63, %v1337_v21  ;;  %vm691_vm2 = vcmp.eq.f32.partialorder %v1368_v56, 0.0  ;;  %vm684_vm3 = vcmp.eq.f32.partialorder %v1361_v51, 0.0 }
 0x164   :  { %v1144_v3 = vpop.eup %1143  ;;  %v660_v5 = vmul.f32 %v1142_v2, %v1339_v26 }
 0x165   :  { %v1146_v6 = vpop.eup %1145  ;;  %796 = vmatmul.mubr.f32.gmra.mrb[14].mxu0 %v644_v4  ;;  %v655_v8 = vsel %vm654_vm8, %v1337_v21, %v653_v1  ;;  %v667_v9 = vmul.f32 %v1144_v3, %v1341_v29 }
 0x166   :  { %v662_v10 = vsel %vm661_vm9, %v1339_v26, %v660_v5  ;;  %v674_v12 = vmul.f32 %v1146_v6, %v1344_v30  ;;  %v658_v16 = vsel %vm656_vm10, %v657_v11, %v655_v8 }
 0x167   :  { %v665_v13 = vsel %vm663_vm11, %v664_v7, %v662_v10  ;;  %v669_v15 = vsel %vm668_vm12, %v1341_v29, %v667_v9 }
 0x168   :  { %800 = vmatprep.mubr.f32.mxu0 %v665_v13  ;;  %v676_v17 = vsel %vm675_vm13, %v1344_v30, %v674_v12  ;;  %v672_v22 = vsel %vm670_vm15, %v671_v18, %v669_v15 }
 0x169   :  { %801 = vmatmul.mubr.f32.gmra.mrb[16].mxu0 %v658_v16  ;;  %v679_v19 = vsel %vm677_vm14, %v678_v14, %v676_v17 }
 0x16a   :  { %805 = vmatprep.mubr.f32.mxu1 %v679_v19 }
 0x16b   :  { %v1148_v20 = vpop.eup %1147  ;;  %806 = vmatmul.mubr.f32.vlgmr.msra.gmra.mrb[12].mxu1 %v672_v22 }
 0x16c   :  { %v1150_v23 = vpop.eup %1149  ;;  %v681_v24 = vmul.f32 %v1148_v20, %v1361_v51 }
 0x16d   :  { %v688_v21 = vmul.f32 %v1150_v23, %v1368_v56 }
 0x16e   :  { %v683_v26 = vsel %vm682_vm0, %v1361_v51, %v681_v24 }
 0x16f   :  { %v690_v27 = vsel %vm689_vm1, %v1368_v56, %v688_v21  ;;  %v686_v30 = vsel %vm684_vm3, %v685_v28, %v683_v26 }
 0x170   :  { %v693_v29 = vsel %vm691_vm2, %v692_v25, %v690_v27 }
 0x171   :  { %810 = vmatprep.mubr.f32.mxu1 %v693_v29 }
 0x172   :  { %811 = vmatmul.mubr.f32.gmra.mrb[14].mxu1 %v686_v30 }
 0x234   :  { %v956_v31 = vpop.f32.mrb[12].mxu0 }
 0x235   :  { %v957_v32 = vpop.f32.mrb[13].mxu0 }
 0x236   :  { %v958_v33 = vadd.f32 %v957_v32, %v956_v31 }
 0x238   :  { %v793_v34 = vadd.f32 1.0, %v958_v33  ;;  %v959_v35 = vpop.f32.mrb[14].mxu0 }
 0x239   :  { %v960_v36 = vpop.f32.mrb[15].mxu0 }
 0x23a   :  { %1151 = vlog2.f32 %v793_v34  ;;  %v961_v37 = vadd.f32 %v960_v36, %v959_v35 }
 0x23c   :  { %v798_v38 = vadd.f32 1.0, %v961_v37  ;;  %v962_v39 = vpop.f32.mrb[16].mxu0 }
 0x23d   :  { %v963_v40 = vpop.f32.mrb[17].mxu0 }
 0x23e   :  { %1153 = vlog2.f32 %v798_v38  ;;  %v964_v41 = vadd.f32 %v963_v40, %v962_v39  ;;  %v965_v42 = vpop.f32.mrb[12].mxu1 }
 0x23f   :  { %v966_v43 = vpop.f32.mrb[13].mxu1 }
 0x240   :  { %v803_v44 = vadd.f32 1.0, %v964_v41  ;;  %v967_v45 = vadd.f32 %v966_v43, %v965_v42 }
 0x242   :  { %1155 = vlog2.f32 %v803_v44  ;;  %v808_v46 = vadd.f32 1.0, %v967_v45 }
 0x244   :  { %v1152_v47 = vpop.eup %1151  ;;  %1157 = vlog2.f32 %v808_v46 }
 0x245   :  { %v968_v48 = vpop.f32.mrb[14].mxu1  ;;  %v817_v49 = vmul.f32 0.6931472, %v1152_v47 }
 0x246   :  { %v969_v50 = vpop.f32.mrb[15].mxu1 }
 0x247   :  { %v970_v51 = vadd.f32 %v969_v50, %v968_v48  ;;  %v826_v52 = vmul.f32 0.4342945, %v817_v49 }
 0x248   :  { %v1154_v53 = vpop.eup %1153 }
 0x249   :  { %v813_v54 = vadd.f32 1.0, %v970_v51  ;;  %831 = vst [vmem:[#allocation8] sm:$0xff] %v826_v52  ;;  %v819_v55 = vmul.f32 0.6931472, %v1154_v53 }
 0x24b   :  { %1159 = vlog2.f32 %v813_v54  ;;  %v827_v56 = vmul.f32 0.4342945, %v819_v55 }
 0x24c   :  { %v1156_v57 = vpop.eup %1155 }
 0x24d   :  { %832 = vst [vmem:[#allocation8 + $0x8] sm:$0xff] %v827_v56  ;;  %v821_v58 = vmul.f32 0.6931472, %v1156_v57 }
 0x24e   :  { %v1158_v59 = vpop.eup %1157 }
 0x24f   :  { %v828_v60 = vmul.f32 0.4342945, %v821_v58  ;;  %v823_v61 = vmul.f32 0.6931472, %v1158_v59 }
 0x251   :  { %833 = vst [vmem:[#allocation8 + $0x10] sm:$0xff] %v828_v60  ;;  %v829_v62 = vmul.f32 0.4342945, %v823_v61 }
 0x253   :  { %834 = vst [vmem:[#allocation8 + $0x18] sm:$0xff] %v829_v62 }
 0x255   :  { %v1160_v63 = vpop.eup %1159 }
 0x256   :  { %v825_v0 = vmul.f32 0.6931472, %v1160_v63 }
 0x258   :  { %v830_v2 = vmul.f32 0.4342945, %v825_v0 }
 0x25a   :  { %835 = vst [vmem:[#allocation8 + $0x20] sm:$0xff] %v830_v2 }
 0x25b   :  { %1238 = shalt.err (!%p1235_p0)
}
 0x25c   :  { %s1239_s27 = scalar_lea.hbm %s1433_s3, 640 }
 0x25d   :  { %p1240_p1 = scmp.ne.s32.totalorder %s1433_s3, %s1239_s27  ;;  %p1243_p2 = scmp.lt.u32.totalorder %s1239_s27, %s1433_s3 }
 0x25f   :  { %p1245_p3 = pnand %p1243_p2, %p1240_p1 }
 0x261   :  { %1248 = shalt.err (!%p1245_p3)
}
 0x262   :  { %847 = dma.vmem_to_hbm [thread:$0]  %s842_s23, 640, %s1433_s3, [#allocation4], %s1259_s1, %s1259_s1, %s1260_s9  }
 0x263   :  { %1253 = dma.done.wait [#allocation4], 640  }
 0x264   :  { %1254 = vsyncadd [#allocation4], 4294966656 }
 0x265   :  { %851 = vsyncpa [#allocation3], 1 }
 0x266   :  { %852 = vsyncpa [#allocation6], 1 }
 0x267   :  { %853 = vsyncpa [#allocation4], 1 }

</bundles_post_ra>
